<compile_context>
chip_gen: v7x
topology: tpu7x:2x2x1
jax: 0.10.0
libtpu: 0.0.40
codegen_flags: <defaults>
</compile_context>

<pallas_src>
import jax
import jax.numpy as jnp
from jax.experimental import pallas as pl
from jax.experimental.pallas import tpu as pltpu

NEG_SLOPE = 0.01

# Real (unpadded) layer dims of the PyTorch module, in forward order.
_LAYER_DIMS = [(43, 50), (50, 100), (100, 200), (200, 2)]
_LAYER_NAMES = ["1", "2", "3", "5"]
# Lane/MXU-friendly padded feature sizes: 43->128, 50->128, 100->128, 200->256, 2->128.
_PADDED = [128, 128, 128, 256, 128]


def _leaky_relu(x):
    # leaky_relu(x, 0.01) == max(x, 0.01*x): one mul + one max on the VPU.
    return jnp.maximum(x, NEG_SLOPE * x)


def _round_up(n, m):
    return ((n + m - 1) // m) * m


def mlp_kernel(x_ref,
               w1_ref, b1_ref,
               w2_ref, b2_ref,
               w3_ref, b3_ref,
               w5_ref, b5_ref,
               o_ref):
    # Compute dtype for MXU inputs (bf16 or f32); accumulation is always f32.
    cdt = w1_ref.dtype

    # fc1 + leaky_relu
    h = jnp.dot(x_ref[...], w1_ref[...], preferred_element_type=jnp.float32)
    h = _leaky_relu(h + b1_ref[...]).astype(cdt)
    # fc2 + leaky_relu
    h = jnp.dot(h, w2_ref[...], preferred_element_type=jnp.float32)
    h = _leaky_relu(h + b2_ref[...]).astype(cdt)
    # fc3 + leaky_relu
    h = jnp.dot(h, w3_ref[...], preferred_element_type=jnp.float32)
    h = _leaky_relu(h + b3_ref[...]).astype(cdt)
    # fc5 + leaky_relu (yes, the PyTorch module applies leaky_relu after the last layer too)
    h = jnp.dot(h, w5_ref[...], preferred_element_type=jnp.float32)
    h = _leaky_relu(h + b5_ref[...])

    o_ref[...] = h.astype(o_ref.dtype)


def xarxa_neuronal_forward(x, params, *, compute_dtype=jnp.bfloat16,
                           block_batch=None):
    """Forward pass of XarxaNeuronal.

    x:       (B, 43) array (any float dtype; cast to f32 like `x.float()`).
    params:  dict with w{1,2,3,5} of shape (in, out) and b{1,2,3,5} of shape (1, out).
    compute_dtype: dtype fed to the MXU (bf16 = native rate; f32 = bit-faithful).
    block_batch:   rows per grid step (multiple of 8). Default: min(1024, B rounded to 8).
    """
    x = jnp.asarray(x, jnp.float32)
    B, f_in = x.shape
    assert f_in == _LAYER_DIMS[0][0], f_in

    # Batch tile: large tiles amortize the ~0.35us per-step overhead; 1024 rows
    # keeps double-buffered x/out tiles + intermediates well under the scoped
    # VMEM limit on all of v5e / v6e / v7x.
    if block_batch is None:
        tb = min(1024, _round_up(max(B, 1), 8))
    else:
        tb = int(block_batch)
    assert tb % 8 == 0, tb
    b_pad = _round_up(max(B, 1), tb)

    f0, f1, f2, f3, f4 = _PADDED

    # --- wrapper-side zero padding (hoisted, done once per call) -------------
    x_pad = jnp.zeros((b_pad, f0), compute_dtype)
    x_pad = x_pad.at[:B, :f_in].set(x.astype(compute_dtype))

    def pad_w(w, shape):
        out = jnp.zeros(shape, compute_dtype)
        return out.at[:w.shape[0], :w.shape[1]].set(w.astype(compute_dtype))

    def pad_b(b, n):
        out = jnp.zeros((1, n), jnp.float32)
        b2 = jnp.asarray(b, jnp.float32).reshape(1, -1)
        return out.at[:, :b2.shape[1]].set(b2)

    w1 = pad_w(params["w1"], (f0, f1)); b1 = pad_b(params["b1"], f1)
    w2 = pad_w(params["w2"], (f1, f2)); b2 = pad_b(params["b2"], f2)
    w3 = pad_w(params["w3"], (f2, f3)); b3 = pad_b(params["b3"], f3)
    w5 = pad_w(params["w5"], (f3, f4)); b5 = pad_b(params["b5"], f4)

    grid = (b_pad // tb,)

    # Constant index_map -> block never changes -> weights/biases stay resident.
    def resident(a):
        return pl.BlockSpec(a.shape, lambda i: (0, 0))

    out_pad = pl.pallas_call(
        mlp_kernel,
        out_shape=jax.ShapeDtypeStruct((b_pad, f4), jnp.float32),
        grid=grid,
        in_specs=[
            pl.BlockSpec((tb, f0), lambda i: (i, 0)),   # x: tiled over batch
            resident(w1), resident(b1),
            resident(w2), resident(b2),
            resident(w3), resident(b3),
            resident(w5), resident(b5),
        ],
        out_specs=pl.BlockSpec((tb, f4), lambda i: (i, 0)),  # lane-dense (128) store
        compiler_params=pltpu.CompilerParams(
            dimension_semantics=("parallel",)),
    )(x_pad, w1, b1, w2, b2, w3, b3, w5, b5)

    # Slice away batch padding and the 126 padded output lanes.
    return out_pad[:B, :_LAYER_DIMS[-1][1]]


def init_params(key):
    """Deterministic init mimicking nn.Linear default (uniform +-1/sqrt(fan_in)).
    Weights stored as (in_features, out_features) so the kernel computes x @ W + b."""
    params = {}
    for (fin, fout), name in zip(_LAYER_DIMS, _LAYER_NAMES):
        key, kw, kb = jax.random.split(key, 3)
        bound = 1.0 / (fin ** 0.5)
        params[f"w{name}"] = jax.random.uniform(
            kw, (fin, fout), jnp.float32, minval=-bound, maxval=bound)
        params[f"b{name}"] = jax.random.uniform(
            kb, (1, fout), jnp.float32, minval=-bound, maxval=bound)
    return params


def reference_forward(x, params):
    """Plain-JAX f32 reference of the PyTorch forward."""
    h = jnp.asarray(x, jnp.float32)
    for name in _LAYER_NAMES:
        h = h @ params[f"w{name}"] + params[f"b{name}"]
        h = _leaky_relu(h)
    return h


if __name__ == "__main__":
    key = jax.random.PRNGKey(0)
    key, kx1, kx2 = jax.random.split(key, 3)
    params = init_params(key)

    # Small batch, default tiling (single grid step).
    x_small = jax.random.normal(kx1, (8, 43), jnp.float32)
    # Batch that is not a multiple of the tile -> exercises batch padding and a
    # multi-step grid (200 rows, 64-row tiles -> grid of 4 with padded rows).
    x_big = jax.random.normal(kx2, (200, 43), jnp.float32)

    # 1) f32 compute path: must match the plain-JAX reference tightly.
    out_f32 = jax.block_until_ready(
        xarxa_neuronal_forward(x_small, params, compute_dtype=jnp.float32))
    ref_small = reference_forward(x_small, params)
    assert out_f32.shape == (8, 2), out_f32.shape
    assert jnp.allclose(out_f32, ref_small, atol=1e-4, rtol=1e-4), (
        float(jnp.max(jnp.abs(out_f32 - ref_small))))

    # 2) bf16 compute path (MXU-native, f32 accumulation): loose tolerance.
    out_bf16 = jax.block_until_ready(
        xarxa_neuronal_forward(x_big, params, compute_dtype=jnp.bfloat16,
                               block_batch=64))
    ref_big = reference_forward(x_big, params)
    assert out_bf16.shape == (200, 2), out_bf16.shape
    assert jnp.allclose(out_bf16, ref_big, atol=5e-2, rtol=5e-2), (
        float(jnp.max(jnp.abs(out_bf16 - ref_big))))

    print("KERNEL_OK")
</pallas_src>

<mosaic_0001>
module attributes {stable_mosaic.version = 11 : i64} {
  func.func @mlp_kernel(%arg0: i32, %arg1: memref<8x128xf32, #tpu.memory_space<vmem>>, %arg2: memref<128x128xf32, #tpu.memory_space<vmem>>, %arg3: memref<1x128xf32, #tpu.memory_space<vmem>>, %arg4: memref<128x128xf32, #tpu.memory_space<vmem>>, %arg5: memref<1x128xf32, #tpu.memory_space<vmem>>, %arg6: memref<128x256xf32, #tpu.memory_space<vmem>>, %arg7: memref<1x256xf32, #tpu.memory_space<vmem>>, %arg8: memref<256x128xf32, #tpu.memory_space<vmem>>, %arg9: memref<1x128xf32, #tpu.memory_space<vmem>>, %arg10: memref<8x128xf32, #tpu.memory_space<vmem>>) attributes {dimension_semantics = [#tpu.dimension_semantics<parallel>], iteration_bounds = array<i64: 1>, scalar_prefetch = 0 : i64, scratch_operands = 0 : i64, tpu.core_type = #tpu.core_type<tc>, window_params = [{transform_indices = @transform_0, window_bounds = array<i64: 8, 128>}, {pipeline_mode = #tpu.pipeline_mode<synchronous>, transform_indices = @transform_1, window_bounds = array<i64: 128, 128>}, {pipeline_mode = #tpu.pipeline_mode<synchronous>, transform_indices = @transform_2, window_bounds = array<i64: 1, 128>}, {pipeline_mode = #tpu.pipeline_mode<synchronous>, transform_indices = @transform_3, window_bounds = array<i64: 128, 128>}, {pipeline_mode = #tpu.pipeline_mode<synchronous>, transform_indices = @transform_4, window_bounds = array<i64: 1, 128>}, {pipeline_mode = #tpu.pipeline_mode<synchronous>, transform_indices = @transform_5, window_bounds = array<i64: 128, 256>}, {pipeline_mode = #tpu.pipeline_mode<synchronous>, transform_indices = @transform_6, window_bounds = array<i64: 1, 256>}, {pipeline_mode = #tpu.pipeline_mode<synchronous>, transform_indices = @transform_7, window_bounds = array<i64: 256, 128>}, {pipeline_mode = #tpu.pipeline_mode<synchronous>, transform_indices = @transform_8, window_bounds = array<i64: 1, 128>}, {transform_indices = @transform_9, window_bounds = array<i64: 8, 128>}]} {
    %c0 = arith.constant 0 : index
    %c0_0 = arith.constant 0 : index
    %0 = vector.load %arg1[%c0, %c0_0] : memref<8x128xf32, #tpu.memory_space<vmem>>, vector<8x128xf32>
    %c0_1 = arith.constant 0 : index
    %c0_2 = arith.constant 0 : index
    %1 = vector.load %arg2[%c0_1, %c0_2] : memref<128x128xf32, #tpu.memory_space<vmem>>, vector<128x128xf32>
    %cst = arith.constant dense<0.000000e+00> : vector<8x128xf32>
    %2 = tpu.matmul %0, %1, %cst {dimension_numbers = #tpu.dot_dimension_numbers<[1], [0], [0], [1], [0, 0, 1, 1], [], []>} : vector<8x128xf32>, vector<128x128xf32>, vector<8x128xf32> -> vector<8x128xf32>
    %c0_3 = arith.constant 0 : index
    %c0_4 = arith.constant 0 : index
    %3 = vector.load %arg3[%c0_3, %c0_4] : memref<1x128xf32, #tpu.memory_space<vmem>>, vector<1x128xf32>
    %4 = vector.broadcast %3 : vector<1x128xf32> to vector<8x128xf32>
    %5 = arith.addf %2, %4 : vector<8x128xf32>
    %cst_5 = arith.constant 0.00999999977 : f32
    %6 = vector.broadcast %cst_5 : f32 to vector<8x128xf32>
    %7 = arith.mulf %6, %5 : vector<8x128xf32>
    %8 = arith.maximumf %5, %7 : vector<8x128xf32>
    %c0_6 = arith.constant 0 : index
    %c0_7 = arith.constant 0 : index
    %9 = vector.load %arg4[%c0_6, %c0_7] : memref<128x128xf32, #tpu.memory_space<vmem>>, vector<128x128xf32>
    %cst_8 = arith.constant dense<0.000000e+00> : vector<8x128xf32>
    %10 = tpu.matmul %8, %9, %cst_8 {dimension_numbers = #tpu.dot_dimension_numbers<[1], [0], [0], [1], [0, 0, 1, 1], [], []>} : vector<8x128xf32>, vector<128x128xf32>, vector<8x128xf32> -> vector<8x128xf32>
    %c0_9 = arith.constant 0 : index
    %c0_10 = arith.constant 0 : index
    %11 = vector.load %arg5[%c0_9, %c0_10] : memref<1x128xf32, #tpu.memory_space<vmem>>, vector<1x128xf32>
    %12 = vector.broadcast %11 : vector<1x128xf32> to vector<8x128xf32>
    %13 = arith.addf %10, %12 : vector<8x128xf32>
    %cst_11 = arith.constant 0.00999999977 : f32
    %14 = vector.broadcast %cst_11 : f32 to vector<8x128xf32>
    %15 = arith.mulf %14, %13 : vector<8x128xf32>
    %16 = arith.maximumf %13, %15 : vector<8x128xf32>
    %c0_12 = arith.constant 0 : index
    %c0_13 = arith.constant 0 : index
    %17 = vector.load %arg6[%c0_12, %c0_13] : memref<128x256xf32, #tpu.memory_space<vmem>>, vector<128x256xf32>
    %cst_14 = arith.constant dense<0.000000e+00> : vector<8x256xf32>
    %18 = tpu.matmul %16, %17, %cst_14 {dimension_numbers = #tpu.dot_dimension_numbers<[1], [0], [0], [1], [0, 0, 1, 1], [], []>} : vector<8x128xf32>, vector<128x256xf32>, vector<8x256xf32> -> vector<8x256xf32>
    %c0_15 = arith.constant 0 : index
    %c0_16 = arith.constant 0 : index
    %19 = vector.load %arg7[%c0_15, %c0_16] : memref<1x256xf32, #tpu.memory_space<vmem>>, vector<1x256xf32>
    %20 = vector.broadcast %19 : vector<1x256xf32> to vector<8x256xf32>
    %21 = arith.addf %18, %20 : vector<8x256xf32>
    %cst_17 = arith.constant 0.00999999977 : f32
    %22 = vector.broadcast %cst_17 : f32 to vector<8x256xf32>
    %23 = arith.mulf %22, %21 : vector<8x256xf32>
    %24 = arith.maximumf %21, %23 : vector<8x256xf32>
    %c0_18 = arith.constant 0 : index
    %c0_19 = arith.constant 0 : index
    %25 = vector.load %arg8[%c0_18, %c0_19] : memref<256x128xf32, #tpu.memory_space<vmem>>, vector<256x128xf32>
    %cst_20 = arith.constant dense<0.000000e+00> : vector<8x128xf32>
    %26 = tpu.matmul %24, %25, %cst_20 {dimension_numbers = #tpu.dot_dimension_numbers<[1], [0], [0], [1], [0, 0, 1, 1], [], []>} : vector<8x256xf32>, vector<256x128xf32>, vector<8x128xf32> -> vector<8x128xf32>
    %c0_21 = arith.constant 0 : index
    %c0_22 = arith.constant 0 : index
    %27 = vector.load %arg9[%c0_21, %c0_22] : memref<1x128xf32, #tpu.memory_space<vmem>>, vector<1x128xf32>
    %28 = vector.broadcast %27 : vector<1x128xf32> to vector<8x128xf32>
    %29 = arith.addf %26, %28 : vector<8x128xf32>
    %cst_23 = arith.constant 0.00999999977 : f32
    %30 = vector.broadcast %cst_23 : f32 to vector<8x128xf32>
    %31 = arith.mulf %30, %29 : vector<8x128xf32>
    %32 = arith.maximumf %29, %31 : vector<8x128xf32>
    %c0_24 = arith.constant 0 : index
    %c0_25 = arith.constant 0 : index
    %33 = vector.load %arg10[%c0_24, %c0_25] : memref<8x128xf32, #tpu.memory_space<vmem>>, vector<8x128xf32>
    tpu.vector_store %arg10[%c0_24, %c0_25], %32 {strides = array<i32>} : memref<8x128xf32, #tpu.memory_space<vmem>>, vector<8x128xf32>,
    return
  }
  func.func @transform_0(%arg0: i32) -> (i32, i32) {
    %c0_i32 = arith.constant 0 : i32
    %c0_i32_0 = arith.constant 0 : i32
    return %arg0, %c0_i32 : i32, i32
  }
  func.func @transform_1(%arg0: i32) -> (i32, i32) {
    %c0_i32 = arith.constant 0 : i32
    %c0_i32_0 = arith.constant 0 : i32
    %c0_i32_1 = arith.constant 0 : i32
    return %c0_i32, %c0_i32_0 : i32, i32
  }
  func.func @transform_2(%arg0: i32) -> (i32, i32) {
    %c0_i32 = arith.constant 0 : i32
    %c0_i32_0 = arith.constant 0 : i32
    %c0_i32_1 = arith.constant 0 : i32
    return %c0_i32, %c0_i32_0 : i32, i32
  }
  func.func @transform_3(%arg0: i32) -> (i32, i32) {
    %c0_i32 = arith.constant 0 : i32
    %c0_i32_0 = arith.constant 0 : i32
    %c0_i32_1 = arith.constant 0 : i32
    return %c0_i32, %c0_i32_0 : i32, i32
  }
  func.func @transform_4(%arg0: i32) -> (i32, i32) {
    %c0_i32 = arith.constant 0 : i32
    %c0_i32_0 = arith.constant 0 : i32
    %c0_i32_1 = arith.constant 0 : i32
    return %c0_i32, %c0_i32_0 : i32, i32
  }
  func.func @transform_5(%arg0: i32) -> (i32, i32) {
    %c0_i32 = arith.constant 0 : i32
    %c0_i32_0 = arith.constant 0 : i32
    %c0_i32_1 = arith.constant 0 : i32
    return %c0_i32, %c0_i32_0 : i32, i32
  }
  func.func @transform_6(%arg0: i32) -> (i32, i32) {
    %c0_i32 = arith.constant 0 : i32
    %c0_i32_0 = arith.constant 0 : i32
    %c0_i32_1 = arith.constant 0 : i32
    return %c0_i32, %c0_i32_0 : i32, i32
  }
  func.func @transform_7(%arg0: i32) -> (i32, i32) {
    %c0_i32 = arith.constant 0 : i32
    %c0_i32_0 = arith.constant 0 : i32
    %c0_i32_1 = arith.constant 0 : i32
    return %c0_i32, %c0_i32_0 : i32, i32
  }
  func.func @transform_8(%arg0: i32) -> (i32, i32) {
    %c0_i32 = arith.constant 0 : i32
    %c0_i32_0 = arith.constant 0 : i32
    %c0_i32_1 = arith.constant 0 : i32
    return %c0_i32, %c0_i32_0 : i32, i32
  }
  func.func @transform_9(%arg0: i32) -> (i32, i32) {
    %c0_i32 = arith.constant 0 : i32
    %c0_i32_0 = arith.constant 0 : i32
    return %arg0, %c0_i32 : i32, i32
  }
}

</mosaic_0001>

<bundles_post_ra>
// kernel: tpu_custom_call.1
= control target key start
LH: loop header
LB: loop body
LE: loop exit
PB: predicated region body
PF: predicated region fallthrough
CT: control target
= control target key end

     0   :  { %14 = vsyncpa [#allocation3], 0  ;;  %s1127_s0 = inlined_call_operand.hbm [shape: f32[8,128], index: 0, kind: input, shape index: {}]   ;;  %s1128_s1 = inlined_call_operand.hbm [shape: f32[128,128], index: 1, kind: input, shape index: {}]   ;;  %s1129_s2 = inlined_call_operand.vmem [shape: f32[1,128], index: 2, kind: input, shape index: {}]   ;;  %s1130_s3 = inlined_call_operand.hbm [shape: f32[128,128], index: 3, kind: input, shape index: {}]   ;;  %s1131_s4 = inlined_call_operand.vmem [shape: f32[1,128], index: 4, kind: input, shape index: {}]   ;;  %s1132_s5 = inlined_call_operand.hbm [shape: f32[128,256], index: 5, kind: input, shape index: {}]   ;;  %s1133_s6 = inlined_call_operand.vmem [shape: f32[1,256], index: 6, kind: input, shape index: {}]   ;;  %s1134_s7 = inlined_call_operand.hbm [shape: f32[256,128], index: 7, kind: input, shape index: {}]   ;;  %s1135_s8 = inlined_call_operand.vmem [shape: f32[1,128], index: 8, kind: input, shape index: {}]   ;;  %s1136_s9 = inlined_call_operand.hbm [shape: f32[8,128], index: 9, kind: output, shape index: {}]  }
   0x1   :  { %15 = vsyncpa [#allocation6], 0 }
   0x2   :  { %16 = vsyncpa [#allocation9], 0 }
   0x3   :  { %17 = vsyncpa [#allocation4], 0  ;;  %s945_s30 = smov [#allocation5]   ;;  %s805_s13 = scalar_lea.hbm %s1128_s1, 2048 }
   0x4   :  { %s33_s10 = sshll.u32 %s945_s30, 4  ;;  %p806_p0 = scmp.ne.s32.totalorder %s1128_s1, %s805_s13  ;;  %s34_s10 = int_to_ptr.vmem [resolvable:$true] %s33_s10 }
   0x5   :  { %p809_p1 = scmp.lt.u32.totalorder %s805_s13, %s1128_s1 }
   0x7   :  { %p811_p2 = pnand %p809_p1, %p806_p0 }
   0x9   :  { %814 = shalt.err (!%p811_p2)
}
   0xa   :  { %s815_s18 = scalar_lea.vmem %s34_s10, 2048  ;;  %p820_p4 = scmp.lt.s32.totalorder %s34_s10, %s34_s10 }
   0xb   :  { %p816_p3 = scmp.ne.s32.totalorder %s34_s10, %s815_s18  ;;  %p821_p5 = scmp.lt.s32.totalorder %s815_s18, %s815_s18 }
   0xd   :  { %p822_p6 = por %p821_p5, %p820_p4 }
   0xf   :  { %p823_p7 = pnand %p822_p6, %p816_p3 }
  0x11   :  { %826 = shalt.err (!%p823_p7)
}
  0x12   :  { %s946_s19 = smov 128   ;;  %s947_s20 = smov 8  }
  0x13   :  { %39 = dma.hbm_to_vmem [thread:$0]  %s1128_s1, 2048, %s34_s10, [#allocation6], %s946_s19, %s946_s19, %s947_s20  }
  0x14   :  { %s948_s23 = smov [#allocation8]   ;;  %s827_s27 = scalar_lea.hbm %s1132_s5, 4096 }
  0x15   :  { %s61_s24 = sshll.u32 %s948_s23, 4  ;;  %p828_p8 = scmp.ne.s32.totalorder %s1132_s5, %s827_s27  ;;  %s62_s24 = int_to_ptr.vmem [resolvable:$true] %s61_s24 }
  0x16   :  { %p831_p9 = scmp.lt.u32.totalorder %s827_s27, %s1132_s5 }
  0x18   :  { %p833_p10 = pnand %p831_p9, %p828_p8 }
  0x1a   :  { %836 = shalt.err (!%p833_p10)
}
  0x1b   :  { %s837_s12 = scalar_lea.vmem %s62_s24, 4096  ;;  %p842_p12 = scmp.lt.s32.totalorder %s62_s24, %s62_s24 }
  0x1c   :  { %p838_p11 = scmp.ne.s32.totalorder %s62_s24, %s837_s12  ;;  %p843_p13 = scmp.lt.s32.totalorder %s837_s12, %s837_s12 }
  0x1e   :  { %p844_p0 = por %p843_p13, %p842_p12 }
  0x20   :  { %p845_p1 = pnand %p844_p0, %p838_p11 }
  0x22   :  { %848 = shalt.err (!%p845_p1)
}
  0x23   :  { %s949_s1 = smov 256   ;;  %s950_s10 = smov 16  }
  0x24   :  { %67 = dma.hbm_to_vmem [thread:$0]  %s1132_s5, 4096, %s62_s24, [#allocation9], %s949_s1, %s949_s1, %s950_s10  }
  0x25   :  { %s951_s15 = smov [#allocation2]   ;;  %s952_s17 = smov [#allocation7]  }
  0x26   :  { %s24_s16 = sshll.u32 %s951_s15, 4  ;;  %s47_s18 = sshll.u32 %s952_s17, 4  ;;  %s25_s16 = int_to_ptr.vmem [resolvable:$true] %s24_s16  ;;  %s1035_s18 = int_to_ptr.vmem [resolvable:$true] %s47_s18 }
  0x27   :  { %s849_s23 = scalar_lea.hbm %s1127_s0, 128 }
  0x28   :  { %p850_p2 = scmp.ne.s32.totalorder %s1127_s0, %s849_s23  ;;  %p853_p3 = scmp.lt.u32.totalorder %s849_s23, %s1127_s0 }
  0x2a   :  { %p855_p4 = pnand %p853_p3, %p850_p2 }
  0x2c   :  { %858 = shalt.err (!%p855_p4)
}
  0x2d   :  { %s859_s5 = scalar_lea.vmem %s25_s16, 128  ;;  %p864_p6 = scmp.lt.s32.totalorder %s25_s16, %s25_s16 }
  0x2e   :  { %p860_p5 = scmp.ne.s32.totalorder %s25_s16, %s859_s5  ;;  %p865_p7 = scmp.lt.s32.totalorder %s859_s5, %s859_s5 }
  0x30   :  { %p866_p8 = por %p865_p7, %p864_p6 }
  0x32   :  { %p867_p9 = pnand %p866_p8, %p860_p5 }
  0x34   :  { %870 = shalt.err (!%p867_p9)
}
  0x35   :  { %27 = dma.hbm_to_vmem [thread:$0]  %s1127_s0, 128, %s25_s16, [#allocation3]  }
  0x36   :  { %s871_s12 = scalar_lea.hbm %s1130_s3, 2048 }
  0x37   :  { %p872_p10 = scmp.ne.s32.totalorder %s1130_s3, %s871_s12  ;;  %p875_p11 = scmp.lt.u32.totalorder %s871_s12, %s1130_s3 }
  0x39   :  { %p877_p12 = pnand %p875_p11, %p872_p10 }
  0x3b   :  { %880 = shalt.err (!%p877_p12)
}
  0x3c   :  { %s881_s15 = scalar_lea.vmem %s1035_s18, 2048  ;;  %p886_p0 = scmp.lt.s32.totalorder %s1035_s18, %s1035_s18 }
  0x3d   :  { %p882_p13 = scmp.ne.s32.totalorder %s1035_s18, %s881_s15  ;;  %p887_p1 = scmp.lt.s32.totalorder %s881_s15, %s881_s15 }
  0x3f   :  { %p888_p2 = por %p887_p1, %p886_p0 }
  0x41   :  { %p889_p3 = pnand %p888_p2, %p882_p13 }
  0x43   :  { %892 = shalt.err (!%p889_p3)
}
  0x44   :  { %53 = dma.hbm_to_vmem [thread:$0]  %s1130_s3, 2048, %s1035_s18, [#allocation6], %s946_s19, %s946_s19, %s947_s20  }
  0x45   :  { %s953_s17 = smov [#allocation10]   ;;  %s893_s25 = scalar_lea.hbm %s1134_s7, 4096 }
  0x46   :  { %s75_s21 = sshll.u32 %s953_s17, 4  ;;  %p894_p4 = scmp.ne.s32.totalorder %s1134_s7, %s893_s25  ;;  %s76_s21 = int_to_ptr.vmem [resolvable:$true] %s75_s21 }
  0x47   :  { %p897_p5 = scmp.lt.u32.totalorder %s893_s25, %s1134_s7 }
  0x49   :  { %p899_p6 = pnand %p897_p5, %p894_p4 }
  0x4b   :  { %902 = shalt.err (!%p899_p6)
}
  0x4c   :  { %s903_s24 = scalar_lea.vmem %s76_s21, 4096  ;;  %p908_p8 = scmp.lt.s32.totalorder %s76_s21, %s76_s21 }
  0x4d   :  { %p904_p7 = scmp.ne.s32.totalorder %s76_s21, %s903_s24  ;;  %p909_p9 = scmp.lt.s32.totalorder %s903_s24, %s903_s24 }
  0x4f   :  { %p910_p10 = por %p909_p9, %p908_p8 }
  0x51   :  { %p911_p11 = pnand %p910_p10, %p904_p7 }
  0x53   :  { %914 = shalt.err (!%p911_p11)
}
  0x54   :  { %81 = dma.hbm_to_vmem [thread:$0]  %s1134_s7, 4096, %s76_s21, [#allocation9], %s946_s19, %s946_s19, %s947_s20  }
  0x55   :  { %937 = dma.done.wait [#allocation3], 128  }
  0x56   :  { %938 = vsyncadd [#allocation3], 4294967168 }
  0x57   :  { %939 = dma.done.wait [#allocation6], 4096  }
  0x58   :  { %940 = vsyncadd [#allocation6], 4294963200 }
  0x59   :  { %941 = dma.done.wait [#allocation9], 8192  }
  0x5a   :  { %942 = vsyncadd [#allocation9], 4294959104  ;;  %v954_v0 = vmov 0.0|0.0   ;;  %vm955_vm0 = vmmov 0   ;;  %v956_v1 = vmov 0.0   ;;  %v100_v2 = vld [vmem:[#allocation5] sm:$0xff] }
  0x5b   :  { %680 = vmatprep.subr.bf16.mxu0 %v954_v0  ;;  %642 = vmatprep.mubr.msk.f32.mxu0 %vm955_vm0, %v956_v1  ;;  %v101_v3 = vld [vmem:[#allocation5 + $0x8] sm:$0xff]  ;;  %v102_v4 = vld [vmem:[#allocation5 + $0x10] sm:$0xff]  ;;  %v103_v6 = vld [vmem:[#allocation5 + $0x18] sm:$0xff] }
  0x5c   :  { %704 = vmatprep.subr.bf16.mxu1 %v954_v0  ;;  %677 = vmatprep.mubr.msk.f32.mxu1 %vm955_vm0, %v956_v1  ;;  %v681_v5 = vpack.c.bf16 %v101_v3, %v100_v2  ;;  %v684_v7 = vpack.c.bf16 %v103_v6, %v102_v4  ;;  %v104_v8 = vld [vmem:[#allocation5 + $0x20] sm:$0xff]  ;;  %v105_v9 = vld [vmem:[#allocation5 + $0x28] sm:$0xff]  ;;  %v197_v12 = vld [vmem:[#allocation7 + $0x10] sm:$0xff] }
  0x5d   :  { %v195_v10 = vld [vmem:[#allocation7] sm:$0xff]  ;;  %v196_v11 = vld [vmem:[#allocation7 + $0x8] sm:$0xff]  ;;  %v198_v13 = vld [vmem:[#allocation7 + $0x18] sm:$0xff]  ;;  %v687_v14 = vpack.c.bf16 %v105_v9, %v104_v8 }
  0x5e   :  { %682 = vmatpush3.bf16.msra.mxu0 %v681_v5  ;;  %v705_v15 = vpack.c.bf16 %v196_v11, %v195_v10  ;;  %v106_v16 = vld [vmem:[#allocation5 + $0x30] sm:$0xff]  ;;  %v107_v17 = vld [vmem:[#allocation5 + $0x38] sm:$0xff]  ;;  %v708_v18 = vpack.c.bf16 %v198_v13, %v197_v12  ;;  %v199_v19 = vld [vmem:[#allocation7 + $0x20] sm:$0xff] }
  0x5f   :  { %683 = vmatprep.subr.bf16.mxu0 %v954_v0  ;;  %v200_v20 = vld [vmem:[#allocation7 + $0x28] sm:$0xff]  ;;  %v690_v21 = vpack.c.bf16 %v107_v17, %v106_v16  ;;  %v108_v22 = vld [vmem:[#allocation5 + $0x40] sm:$0xff]  ;;  %v201_v25 = vld [vmem:[#allocation7 + $0x30] sm:$0xff] }
  0x60   :  { %706 = vmatpush3.bf16.msra.mxu1 %v705_v15  ;;  %v109_v23 = vld [vmem:[#allocation5 + $0x48] sm:$0xff]  ;;  %v711_v24 = vpack.c.bf16 %v200_v20, %v199_v19  ;;  %v202_v26 = vld [vmem:[#allocation7 + $0x38] sm:$0xff]  ;;  %v110_v28 = vld [vmem:[#allocation5 + $0x50] sm:$0xff] }
  0x61   :  { %707 = vmatprep.subr.bf16.mxu1 %v954_v0  ;;  %v693_v27 = vpack.c.bf16 %v109_v23, %v108_v22  ;;  %v111_v29 = vld [vmem:[#allocation5 + $0x58] sm:$0xff]  ;;  %v714_v30 = vpack.c.bf16 %v202_v26, %v201_v25  ;;  %v203_v31 = vld [vmem:[#allocation7 + $0x40] sm:$0xff]  ;;  %v204_v32 = vld [vmem:[#allocation7 + $0x48] sm:$0xff] }
  0x62   :  { %685 = vmatpush3.bf16.msra.mxu0 %v684_v7  ;;  %v696_v33 = vpack.c.bf16 %v111_v29, %v110_v28  ;;  %v112_v34 = vld [vmem:[#allocation5 + $0x60] sm:$0xff]  ;;  %v113_v35 = vld [vmem:[#allocation5 + $0x68] sm:$0xff]  ;;  %v717_v36 = vpack.c.bf16 %v204_v32, %v203_v31  ;;  %v205_v37 = vld [vmem:[#allocation7 + $0x50] sm:$0xff] }
  0x63   :  { %686 = vmatprep.subr.bf16.mxu0 %v954_v0  ;;  %v206_v38 = vld [vmem:[#allocation7 + $0x58] sm:$0xff]  ;;  %v699_v39 = vpack.c.bf16 %v113_v35, %v112_v34  ;;  %v114_v40 = vld [vmem:[#allocation5 + $0x70] sm:$0xff]  ;;  %v207_v45 = vld [vmem:[#allocation7 + $0x60] sm:$0xff] }
  0x64   :  { %709 = vmatpush3.bf16.msra.mxu1 %v708_v18  ;;  %v115_v41 = vld [vmem:[#allocation5 + $0x78] sm:$0xff]  ;;  %v720_v42 = vpack.c.bf16 %v206_v38, %v205_v37  ;;  %v208_v46 = vld [vmem:[#allocation7 + $0x68] sm:$0xff]  ;;  %v209_v48 = vld [vmem:[#allocation7 + $0x70] sm:$0xff] }
  0x65   :  { %710 = vmatprep.subr.bf16.mxu1 %v954_v0  ;;  %v702_v43 = vpack.c.bf16 %v115_v41, %v114_v40  ;;  %v99_v44 = vld [vmem:[#allocation2] sm:$0xff]  ;;  %v723_v47 = vpack.c.bf16 %v208_v46, %v207_v45  ;;  %v291_v51 = vld [vmem:[#allocation8 + $0x8] sm:$0xff]  ;;  %v290_v53 = vld [vmem:[#allocation8] sm:$0xff] }
  0x66   :  { %688 = vmatpush3.bf16.msra.mxu0 %v687_v14  ;;  %v210_v49 = vld [vmem:[#allocation7 + $0x78] sm:$0xff]  ;;  %v292_v55 = vld [vmem:[#allocation8 + $0x10] sm:$0xff]  ;;  %v295_v56 = vld [vmem:[#allocation8 + $0x28] sm:$0xff] }
  0x67   :  { %689 = vmatprep.subr.bf16.mxu0 %v954_v0  ;;  %v726_v50 = vpack.c.bf16 %v210_v49, %v209_v48  ;;  %v293_v52 = vld [vmem:[#allocation8 + $0x18] sm:$0xff]  ;;  %v730_v58 = vpack.c.bf16 %v292_v55, %v290_v53  ;;  %v294_v60 = vld [vmem:[#allocation8 + $0x20] sm:$0xff]  ;;  %v296_v61 = vld [vmem:[#allocation8 + $0x30] sm:$0xff] }
  0x68   :  { %712 = vmatpush3.bf16.msra.mxu1 %v711_v24  ;;  %v728_v54 = vpack.c.bf16 %v293_v52, %v291_v51  ;;  %v297_v57 = vld [vmem:[#allocation8 + $0x38] sm:$0xff]  ;;  %v299_v62 = vld [vmem:[#allocation8 + $0x48] sm:$0xff]  ;;  %v298_v2 = vld [vmem:[#allocation8 + $0x40] sm:$0xff] }
  0x69   :  { %713 = vmatprep.subr.bf16.mxu1 %v954_v0  ;;  %v732_v59 = vpack.c.bf16 %v297_v57, %v295_v56  ;;  %v301_v63 = vld [vmem:[#allocation8 + $0x58] sm:$0xff]  ;;  %v300_v3 = vld [vmem:[#allocation8 + $0x50] sm:$0xff]  ;;  %v303_v4 = vld [vmem:[#allocation8 + $0x68] sm:$0xff] }
  0x6a   :  { %691 = vmatpush3.bf16.msra.mxu0 %v690_v21  ;;  %v305_v5 = vld [vmem:[#allocation8 + $0x78] sm:$0xff]  ;;  %v738_v6 = vpack.c.bf16 %v300_v3, %v298_v2  ;;  %v302_v8 = vld [vmem:[#allocation8 + $0x60] sm:$0xff]  ;;  %v304_v9 = vld [vmem:[#allocation8 + $0x70] sm:$0xff] }
  0x6b   :  { %692 = vmatprep.subr.bf16.mxu0 %v954_v0  ;;  %v740_v7 = vpack.c.bf16 %v305_v5, %v303_v4  ;;  %v307_v10 = vld [vmem:[#allocation8 + $0x88] sm:$0xff]  ;;  %v309_v11 = vld [vmem:[#allocation8 + $0x98] sm:$0xff]  ;;  %v742_v12 = vpack.c.bf16 %v304_v9, %v302_v8  ;;  %v306_v14 = vld [vmem:[#allocation8 + $0x80] sm:$0xff] }
  0x6c   :  { %715 = vmatpush3.bf16.msra.mxu1 %v714_v30  ;;  %v744_v13 = vpack.c.bf16 %v309_v11, %v307_v10  ;;  %v308_v15 = vld [vmem:[#allocation8 + $0x90] sm:$0xff]  ;;  %v311_v16 = vld [vmem:[#allocation8 + $0xa8] sm:$0xff]  ;;  %v313_v17 = vld [vmem:[#allocation8 + $0xb8] sm:$0xff] }
  0x6d   :  { %716 = vmatprep.subr.bf16.mxu1 %v954_v0  ;;  %v746_v18 = vpack.c.bf16 %v308_v15, %v306_v14  ;;  %v748_v19 = vpack.c.bf16 %v313_v17, %v311_v16  ;;  %v310_v20 = vld [vmem:[#allocation8 + $0xa0] sm:$0xff]  ;;  %v312_v21 = vld [vmem:[#allocation8 + $0xb0] sm:$0xff]  ;;  %v315_v22 = vld [vmem:[#allocation8 + $0xc8] sm:$0xff] }
  0x6e   :  { %694 = vmatpush3.bf16.msra.mxu0 %v693_v27  ;;  %v317_v23 = vld [vmem:[#allocation8 + $0xd8] sm:$0xff]  ;;  %v750_v24 = vpack.c.bf16 %v312_v21, %v310_v20  ;;  %v314_v32 = vld [vmem:[#allocation8 + $0xc0] sm:$0xff]  ;;  %v319_v35 = vld [vmem:[#allocation8 + $0xe8] sm:$0xff] }
  0x6f   :  { %695 = vmatprep.subr.bf16.mxu0 %v954_v0  ;;  %v752_v25 = vpack.c.bf16 %v317_v23, %v315_v22  ;;  %v538_v26 = vld [vmem:[%s1129_s2] ss:$0 sm:$0xff]  ;;  %v318_v38 = vld [vmem:[#allocation8 + $0xe0] sm:$0xff]  ;;  %v410_v45 = vld [vmem:[#allocation10 + $0x8] sm:$0xff] }
  0x70   :  { %718 = vmatpush3.bf16.msra.mxu1 %v717_v36  ;;  %v321_v36 = vld [vmem:[#allocation8 + $0xf8] sm:$0xff]  ;;  %v425_v41 = vld [vmem:[#allocation10 + $0x80] sm:$0xff]  ;;  %v427_v46 = vld [vmem:[#allocation10 + $0x90] sm:$0xff] }
  0x71   :  { %719 = vmatprep.subr.bf16.mxu1 %v954_v0  ;;  %v756_v37 = vpack.c.bf16 %v321_v36, %v319_v35  ;;  %v412_v51 = vld [vmem:[#allocation10 + $0x18] sm:$0xff]  ;;  %v429_v52 = vld [vmem:[#allocation10 + $0xa0] sm:$0xff]  ;;  %v430_v53 = vld [vmem:[#allocation10 + $0xa8] sm:$0xff] }
  0x72   :  { %697 = vmatpush3.bf16.msra.mxu0 %v696_v33  ;;  %v316_v33 = vld [vmem:[#allocation8 + $0xd0] sm:$0xff]  ;;  %v768_v55 = vpack.c.bf16 %v430_v53, %v429_v52  ;;  %v413_v56 = vld [vmem:[#allocation10 + $0x20] sm:$0xff]  ;;  %v414_v57 = vld [vmem:[#allocation10 + $0x28] sm:$0xff] }
  0x73   :  { %698 = vmatprep.subr.bf16.mxu0 %v954_v0  ;;  %v754_v34 = vpack.c.bf16 %v316_v33, %v314_v32  ;;  %v417_v4 = vld [vmem:[#allocation10 + $0x40] sm:$0xff]  ;;  %v418_v5 = vld [vmem:[#allocation10 + $0x48] sm:$0xff]  ;;  %v419_v10 = vld [vmem:[#allocation10 + $0x50] sm:$0xff] }
  0x74   :  { %721 = vmatpush3.bf16.msra.mxu1 %v720_v42  ;;  %v426_v42 = vld [vmem:[#allocation10 + $0x88] sm:$0xff]  ;;  %v778_v8 = vpack.c.bf16 %v418_v5, %v417_v4  ;;  %v420_v11 = vld [vmem:[#allocation10 + $0x58] sm:$0xff]  ;;  %v421_v22 = vld [vmem:[#allocation10 + $0x60] sm:$0xff] }
  0x75   :  { %722 = vmatprep.subr.bf16.mxu1 %v954_v0  ;;  %v438_v20 = vld [vmem:[#allocation10 + $0xe8] sm:$0xff] }
  0x76   :  { %700 = vmatpush3.bf16.msra.mxu0 %v699_v39  ;;  %v320_v39 = vld [vmem:[#allocation8 + $0xf0] sm:$0xff]  ;;  %v422_v23 = vld [vmem:[#allocation10 + $0x68] sm:$0xff] }
  0x77   :  { %701 = vmatprep.subr.bf16.mxu0 %v954_v0  ;;  %v758_v40 = vpack.c.bf16 %v320_v39, %v318_v38 }
  0x78   :  { %724 = vmatpush3.bf16.msra.mxu1 %v723_v47  ;;  %v428_v47 = vld [vmem:[#allocation10 + $0x98] sm:$0xff] }
  0x79   :  { %725 = vmatprep.subr.bf16.mxu1 %v954_v0  ;;  %v734_v0 = vpack.c.bf16 %v296_v61, %v294_v60  ;;  %v764_v49 = vpack.c.bf16 %v428_v47, %v427_v46  ;;  %v770_v60 = vpack.c.bf16 %v414_v57, %v413_v56  ;;  %v540_v47 = vld [vmem:[%s1135_s8] ss:$0 sm:$0xff] }
  0x7a   :  { %703 = vmatpush3.bf16.msra.mxu0 %v702_v43  ;;  %v409_v43 = vld [vmem:[#allocation10] sm:$0xff] }
  0x7b   :  { %729 = vmatprep.subr.bf16.mxu0 %v728_v54  ;;  %v762_v48 = vpack.c.bf16 %v410_v45, %v409_v43 }
  0x7c   :  { %727 = vmatpush3.bf16.msra.mxu1 %v726_v50  ;;  %v411_v50 = vld [vmem:[#allocation10 + $0x10] sm:$0xff] }
  0x7d   :  { %643 = vmatmul.mubr.f32.vlgmr.msra.gmra.mrb[0].mxu0 %v99_v44  ;;  %v760_v44 = vpack.c.bf16 %v426_v42, %v425_v41  ;;  %v766_v54 = vpack.c.bf16 %v412_v51, %v411_v50 }
  0x7e   :  { %398 = vmatprep.mubr.f32.mxu0 %v956_v1  ;;  %731 = vmatpush1.bf16.msra.mxu0 %v730_v58  ;;  %v736_v1 = vpack.c.bf16 %v301_v63, %v299_v62  ;;  %v431_v58 = vld [vmem:[#allocation10 + $0xb0] sm:$0xff]  ;;  %v416_v63 = vld [vmem:[#allocation10 + $0x38] sm:$0xff] }
  0x7f   :  { %733 = vmatprep.subr.bf16.mxu0 %v732_v59  ;;  %761 = vmatprep.subr.bf16.mxu1 %v760_v44  ;;  %v432_v59 = vld [vmem:[#allocation10 + $0xb8] sm:$0xff]  ;;  %v415_v62 = vld [vmem:[#allocation10 + $0x30] sm:$0xff] }
  0x80   :  { %v772_v61 = vpack.c.bf16 %v432_v59, %v431_v58  ;;  %v774_v2 = vpack.c.bf16 %v416_v63, %v415_v62 }
  0x82   :  { %735 = vmatpush1.bf16.msra.mxu0 %v734_v0  ;;  %v433_v0 = vld [vmem:[#allocation10 + $0xc0] sm:$0xff] }
  0x83   :  { %737 = vmatprep.subr.bf16.mxu0 %v736_v1  ;;  %v434_v1 = vld [vmem:[#allocation10 + $0xc8] sm:$0xff] }
  0x84   :  { %v776_v3 = vpack.c.bf16 %v434_v1, %v433_v0 }
  0x86   :  { %739 = vmatpush1.bf16.msra.mxu0 %v738_v6  ;;  %v435_v6 = vld [vmem:[#allocation10 + $0xd0] sm:$0xff] }
  0x87   :  { %741 = vmatprep.subr.bf16.mxu0 %v740_v7  ;;  %v436_v7 = vld [vmem:[#allocation10 + $0xd8] sm:$0xff] }
  0x88   :  { %v780_v9 = vpack.c.bf16 %v436_v7, %v435_v6 }
  0x8a   :  { %743 = vmatpush1.bf16.msra.mxu0 %v742_v12  ;;  %v782_v12 = vpack.c.bf16 %v420_v11, %v419_v10 }
  0x8b   :  { %745 = vmatprep.subr.bf16.mxu0 %v744_v13  ;;  %v539_v13 = vld [vmem:[%s1131_s4] ss:$0 sm:$0xff] }
  0x8e   :  { %747 = vmatpush1.bf16.msra.mxu0 %v746_v18 }
  0x8f   :  { %749 = vmatprep.subr.bf16.mxu0 %v748_v19  ;;  %v437_v19 = vld [vmem:[#allocation10 + $0xe0] sm:$0xff] }
  0x90   :  { %v784_v21 = vpack.c.bf16 %v438_v20, %v437_v19 }
  0x92   :  { %751 = vmatpush1.bf16.msra.mxu0 %v750_v24  ;;  %v786_v24 = vpack.c.bf16 %v422_v23, %v421_v22 }
  0x93   :  { %753 = vmatprep.subr.bf16.mxu0 %v752_v25  ;;  %v439_v25 = vld [vmem:[#allocation10 + $0xf0] sm:$0xff] }
  0x96   :  { %755 = vmatpush1.bf16.msra.mxu0 %v754_v34  ;;  %v322_v34 = vld [vmem:[%s1133_s6] sm:$0x3]  ;;  %s957_s6 = smov [#allocation11]  }
  0x97   :  { %757 = vmatprep.subr.bf16.mxu0 %v756_v37  ;;  %s527_s12 = sshll.u32 %s957_s6, 4  ;;  %s528_s12 = int_to_ptr.vmem [resolvable:$true] %s527_s12 }
  0x98   :  { %s915_s1 = scalar_lea.vmem %s528_s12, 128  ;;  %p920_p13 = scmp.lt.s32.totalorder %s528_s12, %s528_s12 }
  0x99   :  { %p916_p12 = scmp.ne.s32.totalorder %s528_s12, %s915_s1  ;;  %p921_p0 = scmp.lt.s32.totalorder %s915_s1, %s915_s1 }
  0x9a   :  { %759 = vmatpush1.bf16.msra.mxu0 %v758_v40 }
  0x9b   :  { %p922_p1 = por %p921_p0, %p920_p13 }
  0x9d   :  { %p923_p2 = pnand %p922_p1, %p916_p12 }
 0x150   :  { %v189_v27 = vpop.f32.mrb[0].mxu0 }
 0x151   :  { %v190_v28 = vadd.f32 %v538_v26, %v189_v27  ;;  %v644_v29 = vpop.f32.mrb[1].mxu0  ;;  %v440_v26 = vld [vmem:[#allocation10 + $0xf8] sm:$0xff] }
 0x152   :  { %v788_v27 = vpack.c.bf16 %v440_v26, %v439_v25  ;;  %v424_v29 = vld [vmem:[#allocation10 + $0x78] sm:$0xff] }
 0x153   :  { %v193_v30 = vmul.f32 0.01, %v190_v28 }
 0x155   :  { %v194_v31 = vmax.f32 %v190_v28, %v193_v30  ;;  %v423_v28 = vld [vmem:[#allocation10 + $0x70] sm:$0xff] }
 0x156   :  { %v790_v30 = vpack.c.bf16 %v424_v29, %v423_v28 }
 0x157   :  { %678 = vmatmul.mubr.f32.vlgmr.msra.gmra.mrb[0].mxu1 %v194_v31  ;;  %v324_v31 = vlaneseq }
 0x158   :  { %763 = vmatpush3.bf16.msra.mxu1 %v762_v48 }
 0x159   :  { %765 = vmatprep.subr.bf16.mxu1 %v764_v49  ;;  %v325_v32 = vshrl.u32 %v324_v31, 7 }
 0x15b   :  { %v326_v33 = vsub.s32 0, %v325_v32  ;;  %v330_v35 = vsub.s32 1, %v325_v32 }
 0x15c   :  { %767 = vmatpush3.bf16.msra.mxu1 %v766_v54 }
 0x15d   :  { %769 = vmatprep.subr.bf16.mxu1 %v768_v55  ;;  %v327_v36 = vrot.slane %v322_v34, %v326_v33  ;;  %v331_v37 = vrot.slane %v322_v34, %v330_v35 }
 0x160   :  { %771 = vmatpush3.bf16.msra.mxu1 %v770_v60 }
 0x161   :  { %773 = vmatprep.subr.bf16.mxu1 %v772_v61 }
 0x164   :  { %775 = vmatpush3.bf16.msra.mxu1 %v774_v2 }
 0x165   :  { %777 = vmatprep.subr.bf16.mxu1 %v776_v3 }
 0x168   :  { %779 = vmatpush3.bf16.msra.mxu1 %v778_v8 }
 0x169   :  { %781 = vmatprep.subr.bf16.mxu1 %v780_v9 }
 0x16c   :  { %783 = vmatpush3.bf16.msra.mxu1 %v782_v12 }
 0x16d   :  { %785 = vmatprep.subr.bf16.mxu1 %v784_v21 }
 0x170   :  { %787 = vmatpush3.bf16.msra.mxu1 %v786_v24 }
 0x171   :  { %789 = vmatprep.subr.bf16.mxu1 %v788_v27 }
 0x174   :  { %791 = vmatpush3.bf16.msra.mxu1 %v790_v30 }
 0x22a   :  { %v284_v14 = vpop.f32.mrb[0].mxu1 }
 0x22b   :  { %v285_v15 = vadd.f32 %v539_v13, %v284_v14  ;;  %v679_v16 = vpop.f32.mrb[1].mxu1 }
 0x22d   :  { %v288_v17 = vmul.f32 0.01, %v285_v15 }
 0x22f   :  { %v289_v18 = vmax.f32 %v285_v15, %v288_v17 }
 0x231   :  { %399 = vmatmul.mubr.f32.vlgmr.msra.gmra.mrb[2].mxu0 %v289_v18 }
 0x304   :  { %v400_v38 = vpop.f32.mrb[2].mxu0 }
 0x305   :  { %v401_v39 = vadd.f32 %v400_v38, %v327_v36  ;;  %v402_v40 = vpop.f32.mrb[3].mxu0 }
 0x306   :  { %v403_v41 = vadd.f32 %v402_v40, %v331_v37 }
 0x307   :  { %v405_v42 = vmul.f32 0.01, %v401_v39 }
 0x308   :  { %v406_v43 = vmul.f32 0.01, %v403_v41 }
 0x309   :  { %v407_v45 = vmax.f32 %v401_v39, %v405_v42 }
 0x30a   :  { %v408_v44 = vmax.f32 %v403_v41, %v406_v43 }
 0x30c   :  { %512 = vmatprep.mubr.f32.mxu1 %v408_v44 }
 0x30d   :  { %513 = vmatmul.mubr.f32.vlgmr.msra.gmra.mrb[2].mxu1 %v407_v45 }
 0x3e0   :  { %v607_v46 = vpop.f32.mrb[2].mxu1 }
 0x3e1   :  { %v608_v48 = vpop.f32.mrb[3].mxu1 }
 0x3e2   :  { %v609_v49 = vadd.f32 %v608_v48, %v607_v46 }
 0x3e4   :  { %v515_v50 = vadd.f32 %v609_v49, %v540_v47 }
 0x3e6   :  { %v518_v51 = vmul.f32 0.01, %v515_v50 }
 0x3e8   :  { %v519_v52 = vmax.f32 %v515_v50, %v518_v51 }
 0x3ea   :  { %520 = vst [vmem:[#allocation11] sm:$0xff] %v519_v52 }
 0x3eb   :  { %926 = shalt.err (!%p923_p2)
}
 0x3ec   :  { %s927_s8 = scalar_lea.hbm %s1136_s9, 128 }
 0x3ed   :  { %p928_p3 = scmp.ne.s32.totalorder %s1136_s9, %s927_s8  ;;  %p931_p4 = scmp.lt.u32.totalorder %s927_s8, %s1136_s9 }
 0x3ef   :  { %p933_p5 = pnand %p931_p4, %p928_p3 }
 0x3f1   :  { %936 = shalt.err (!%p933_p5)
}
 0x3f2   :  { %530 = dma.vmem_to_hbm [thread:$0]  %s528_s12, 128, %s1136_s9, [#allocation4]  }
 0x3f3   :  { %943 = dma.done.wait [#allocation4], 128  }
 0x3f4   :  { %944 = vsyncadd [#allocation4], 4294967168 }
 0x3f5   :  { %534 = vsyncpa [#allocation3], 1 }
 0x3f6   :  { %535 = vsyncpa [#allocation6], 1 }
 0x3f7   :  { %536 = vsyncpa [#allocation9], 1 }
 0x3f8   :  { %537 = vsyncpa [#allocation4], 1 }

</bundles_post_ra>
